<compile_context>
chip_gen: v6e
topology: v6e:2x2x1
jax: 0.10.0
libtpu: 0.0.40
codegen_flags: <defaults>
</compile_context>

<pallas_src>
import functools
import math

import jax
import jax.numpy as jnp
from jax.experimental import pallas as pl
from jax.experimental.pallas import tpu as pltpu


# ---------------------------------------------------------------------------
# small helpers
# ---------------------------------------------------------------------------

@functools.lru_cache(maxsize=None)
def _vmem_limit_bytes():
    """Per-generation VMEM budget (~3/4 of physical), with a safe fallback."""
    try:
        cap = int(getattr(pltpu.get_tpu_info(), "vmem_capacity_bytes", 0) or 0)
        if cap > 0:
            return int(min(cap * 3 // 4, 100 * 1024 * 1024))
    except Exception:
        pass
    return 64 * 1024 * 1024


def _pick_cout_tile(cout):
    if cout <= 256:
        return cout
    for tc in (256, 128):
        if cout % tc == 0:
            return tc
    return cout


def _pick_row_tile(ho, wo, tc, budget_bytes=128 * 1024):
    """Largest divisor of Ho whose (TR*Wo, TC) f32 accumulator fits the budget,
    keeps the output block sublane-aligned (TR*Wo % 8 == 0) and, preferably,
    yields >= 2 row tiles (pipeline depth / v7x megacore sharding)."""
    divisors = [d for d in range(1, ho + 1) if ho % d == 0]
    legal = [d for d in divisors
             if (d * wo) % 8 == 0 and d * wo * tc * 4 <= budget_bytes]
    multi = [d for d in legal if ho // d >= 2]
    if multi:
        return max(multi)
    if legal:
        return max(legal)
    return ho          # single full-extent block is always layout-legal


def _bn_fold(bn, eps=1e-5):
    scale = bn["gamma"] / jnp.sqrt(bn["var"] + eps)
    bias = bn["beta"] - bn["mean"] * scale
    return scale, bias


def _fold_w3x3(w_oihw):
    """PyTorch (Cout, Cin, 3, 3) -> (3, 3*Cin, Cout): row-tap major, the three
    column taps folded into the contraction dim in (dj, cin) order (matches
    _fold_phases)."""
    co, ci, kh, kw = w_oihw.shape
    return jnp.transpose(w_oihw, (2, 3, 1, 0)).reshape(kh, kw * ci, co)


def _fold_phases(x_nhwc, stride):
    """Zero-pad (pad=1), split rows into `stride` phases, fold the 3 (already
    column-strided) column taps into the channel dim, flatten space.

    Returns `stride` arrays of shape (N, (Ho+ext)*Wo, 3*Cin) in bf16 where
    phase[di % stride], rows [io + di//stride], holds the input rows needed by
    3x3-conv row tap di at output row io.  All of this fuses into one XLA pass.
    """
    n, h, w, c = x_nhwc.shape
    ho, wo = h // stride, w // stride
    ext = 2 // stride
    xp = jnp.pad(x_nhwc, ((0, 0), (1, 1), (1, 1), (0, 0)))
    phases = []
    for p in range(stride):
        rows = xp[:, p::stride, :, :][:, :ho + ext]
        cols = [rows[:, :, dj::stride, :][:, :, :wo, :] for dj in range(3)]
        ph = jnp.concatenate(cols, axis=-1)                 # (N, Ho+ext, Wo, 3*Cin)
        phases.append(ph.reshape(n, (ho + ext) * wo, 3 * c).astype(jnp.bfloat16))
    return phases


# ---------------------------------------------------------------------------
# Fused 3x3 conv kernel (pad=1, stride in {1,2}) with per-channel epilogue
# ---------------------------------------------------------------------------

def fused_conv3x3(x_nhwc, w_fold, *, stride,
                  prelu_slope=None, bn_scale=None, bn_bias=None,
                  shortcut=None, shortcut_w=None,
                  shortcut_scale=None, shortcut_bias=None,
                  out_dtype=jnp.float32):
    """3x3 conv (zero pad=1) + fused per-channel epilogue as one Pallas kernel.

    x_nhwc             : (N, H, W, Cin)    conv input (BN already applied if any)
    w_fold             : (3, 3*Cin, Cout)  weight, row-tap major, columns in K
    prelu_slope        : (Cout,)           fused PReLU slope, or None
    bn_scale / bn_bias : (Cout,)           fused output affine (folded BN), or None
    shortcut           : (N, Ho*Wo, Cs)    residual tensor added at the end, or None
    shortcut_w         : (Cs, Cout)        optional fused 1x1 shortcut conv
                                           (+ shortcut_scale/bias affine)
    """
    assert stride in (1, 2), "bottleneck_IR_Equal only uses stride 1 or 2"
    N, H, W, Cin = x_nhwc.shape
    assert H % stride == 0 and W % stride == 0
    K = 3 * Cin
    Cout = w_fold.shape[-1]
    Ho, Wo = H // stride, W // stride
    HWo = Ho * Wo
    ext = 2 // stride
    HWp = (Ho + ext) * Wo

    has_bn = bn_scale is not None
    has_prelu = prelu_slope is not None
    has_sc = shortcut is not None
    sc_conv = shortcut_w is not None
    Cs = shortcut.shape[-1] if has_sc else 0
    if has_sc and not sc_conv:
        assert Cs == Cout

    TC = _pick_cout_tile(Cout)
    TR = _pick_row_tile(Ho, Wo, TC)
    row_block = TR * Wo
    n_rt, n_ct = Ho // TR, Cout // TC

    phases = _fold_phases(x_nhwc, stride)

    def kernel(*refs):
        it = iter(refs)
        ph_refs = [next(it) for _ in range(stride)]
        w_ref = next(it)
        if has_bn:
            s_ref, b_ref = next(it), next(it)
        if has_prelu:
            slope_ref = next(it)
        if has_sc:
            sc_ref = next(it)
            if sc_conv:
                wsc_ref, ssc_ref, bsc_ref = next(it), next(it), next(it)
        o_ref = next(it)

        base = pl.program_id(1) * row_block
        if row_block % 8 == 0:
            base = pl.multiple_of(base, 8)

        # 3x3 conv = 3 deep (K = 3*Cin) MXU matmuls over full-width, contiguous
        # row slabs, chained into a single accumulator (MRB-friendly on v7x).
        acc = None
        for di in range(3):
            patch = ph_refs[di % stride][
                0, pl.ds(base + (di // stride) * Wo, row_block), :]
            part = jnp.dot(patch, w_ref[di], preferred_element_type=jnp.float32)
            acc = part if acc is None else acc + part

        y = acc                                              # f32 (row_block, TC)
        if has_bn:
            y = y * s_ref[...] + b_ref[...]                  # folded BatchNorm
        if has_prelu:
            y = jnp.where(y > 0, y, y * slope_ref[...])      # per-channel PReLU
        if has_sc:
            sc = sc_ref[0]
            if sc_conv:                                      # fused 1x1 shortcut conv + BN
                sc = jnp.dot(sc, wsc_ref[...], preferred_element_type=jnp.float32)
                sc = sc * ssc_ref[...] + bsc_ref[...]
            y = y + sc.astype(jnp.float32)                   # residual add
        o_ref[...] = y.astype(o_ref.dtype)[None]

    vec = lambda v: v.reshape(1, Cout).astype(jnp.float32)

    args = list(phases) + [w_fold.astype(jnp.bfloat16)]
    in_specs = [pl.BlockSpec((1, HWp, K), lambda n, r, c: (n, 0, 0))
                for _ in range(stride)]
    in_specs.append(pl.BlockSpec((3, K, TC), lambda n, r, c: (0, 0, c)))
    if has_bn:
        args += [vec(bn_scale), vec(bn_bias)]
        in_specs += [pl.BlockSpec((1, TC), lambda n, r, c: (0, c))] * 2
    if has_prelu:
        args.append(vec(prelu_slope))
        in_specs.append(pl.BlockSpec((1, TC), lambda n, r, c: (0, c)))
    if has_sc:
        args.append(shortcut.astype(jnp.bfloat16))
        if sc_conv:
            in_specs.append(
                pl.BlockSpec((1, row_block, Cs), lambda n, r, c: (n, r, 0)))
            args += [shortcut_w.astype(jnp.bfloat16),
                     vec(shortcut_scale), vec(shortcut_bias)]
            in_specs += [pl.BlockSpec((Cs, TC), lambda n, r, c: (0, c)),
                         pl.BlockSpec((1, TC), lambda n, r, c: (0, c)),
                         pl.BlockSpec((1, TC), lambda n, r, c: (0, c))]
        else:
            in_specs.append(
                pl.BlockSpec((1, row_block, TC), lambda n, r, c: (n, r, c)))

    flops = 6 * N * HWo * K * Cout + (2 * N * HWo * Cs * Cout if sc_conv else 0)
    bytes_accessed = (stride * N * HWp * K * 2 + 3 * K * Cout * 2
                      + N * HWo * Cout * jnp.dtype(out_dtype).itemsize
                      + (N * HWo * Cs * 2 if has_sc else 0)
                      + (Cs * Cout * 2 if sc_conv else 0))

    out_flat = pl.pallas_call(
        kernel,
        out_shape=jax.ShapeDtypeStruct((N, HWo, Cout), out_dtype),
        grid_spec=pltpu.PrefetchScalarGridSpec(
            num_scalar_prefetch=0,
            grid=(N, n_rt, n_ct),
            in_specs=in_specs,
            out_specs=pl.BlockSpec((1, row_block, TC), lambda n, r, c: (n, r, c)),
        ),
        compiler_params=pltpu.CompilerParams(
            dimension_semantics=("parallel", "parallel", "parallel"),
            vmem_limit_bytes=_vmem_limit_bytes(),
        ),
        cost_estimate=pl.CostEstimate(flops=int(flops), transcendentals=0,
                                      bytes_accessed=int(bytes_accessed)),
    )(*args)
    return out_flat.reshape(N, Ho, Wo, Cout)


# ---------------------------------------------------------------------------
# bottleneck_IR_Equal forward (plain-JAX glue around the two fused kernels)
# ---------------------------------------------------------------------------

@functools.partial(jax.jit, static_argnums=(2, 3, 4))
def bottleneck_ir_equal_forward(x_nchw, params, in_channel, depth, stride):
    x = jnp.transpose(x_nchw, (0, 2, 3, 1)).astype(jnp.float32)   # NCHW -> NHWC
    N, H, W, _ = x.shape
    Ho, Wo = H // stride, W // stride

    # --- residual branch, conv1 + PReLU ---
    # BN1 is applied to the activations here (XLA fuses it into kernel 1's
    # pad/column-fold pass): exact, and robust to gamma ~= 0 (no b/s division).
    s1, b1 = _bn_fold(params["bn1"])
    x_bn = x * s1 + b1
    w1 = _fold_w3x3(params["w_conv1"]) * (1.0 / math.sqrt(in_channel * 9))
    r1 = fused_conv3x3(x_bn, w1, stride=1, prelu_slope=params["prelu"],
                       out_dtype=jnp.bfloat16)    # bf16: feeds straight into conv2

    # --- shortcut branch inputs (fused into the conv2 kernel) ---
    xs = x[:, ::stride, ::stride, :]
    if in_channel == depth:
        # MaxPool2d(1, stride) == strided subsample (identity for stride=1)
        sc = xs.reshape(N, Ho * Wo, depth)
        w_sc = s_sc = b_sc = None
    else:
        # EqualConv2d(in_channel, depth, 1, stride) + BatchNorm(depth)
        sc = xs.reshape(N, Ho * Wo, in_channel)
        w_sc = (jnp.transpose(params["w_sc"], (2, 3, 1, 0)).reshape(in_channel, depth)
                * (1.0 / math.sqrt(in_channel)))
        s_sc, b_sc = _bn_fold(params["bn_sc"])

    # --- conv2 + BN2 + (1x1 shortcut conv + BN) + residual add: one kernel ---
    s2, b2 = _bn_fold(params["bn2"])
    w2 = _fold_w3x3(params["w_conv2"]) * (1.0 / math.sqrt(depth * 9))
    out = fused_conv3x3(r1, w2, stride=stride, bn_scale=s2, bn_bias=b2,
                        shortcut=sc, shortcut_w=w_sc,
                        shortcut_scale=s_sc, shortcut_bias=b_sc,
                        out_dtype=jnp.float32)
    return jnp.transpose(out, (0, 3, 1, 2))                   # back to NCHW


# ---------------------------------------------------------------------------
# Pure-JAX reference (faithful module semantics, f32) and synthetic params
# ---------------------------------------------------------------------------

def _conv_ref(x, w_oihw, scale, stride, padding):
    w = jnp.transpose(w_oihw, (2, 3, 1, 0)).astype(jnp.float32) * scale
    return jax.lax.conv_general_dilated(
        x, w, window_strides=(stride, stride),
        padding=((padding, padding), (padding, padding)),
        dimension_numbers=("NHWC", "HWIO", "NHWC"),
        precision=jax.lax.Precision.HIGHEST)


def reference_forward(x_nchw, params, in_channel, depth, stride, eps=1e-5):
    x = jnp.transpose(x_nchw, (0, 2, 3, 1)).astype(jnp.float32)

    def bn(v, p):
        s = p["gamma"] / jnp.sqrt(p["var"] + eps)
        return v * s + (p["beta"] - p["mean"] * s)

    if in_channel == depth:
        sc = x[:, ::stride, ::stride, :]
    else:
        sc = bn(_conv_ref(x, params["w_sc"], 1.0 / math.sqrt(in_channel), stride, 0),
                params["bn_sc"])

    r = bn(x, params["bn1"])
    r = _conv_ref(r, params["w_conv1"], 1.0 / math.sqrt(in_channel * 9), 1, 1)
    r = jnp.where(r > 0, r, r * params["prelu"][None, None, None, :])
    r = _conv_ref(r, params["w_conv2"], 1.0 / math.sqrt(depth * 9), stride, 1)
    r = bn(r, params["bn2"])
    return jnp.transpose(r + sc, (0, 3, 1, 2))


def init_params(key, in_channel, depth):
    keys = jax.random.split(key, 6)

    def bn_params(k, c):
        k1, k2, k3, k4 = jax.random.split(k, 4)
        return dict(
            gamma=1.0 + 0.1 * jax.random.normal(k1, (c,), jnp.float32),
            beta=0.1 * jax.random.normal(k2, (c,), jnp.float32),
            mean=0.1 * jax.random.normal(k3, (c,), jnp.float32),
            var=1.0 + 0.1 * jax.random.uniform(k4, (c,), jnp.float32),
        )

    return dict(
        bn1=bn_params(keys[0], in_channel),
        w_conv1=jax.random.normal(keys[1], (depth, in_channel, 3, 3), jnp.float32),
        prelu=0.25 * jnp.ones((depth,), jnp.float32),        # PyTorch PReLU default
        w_conv2=jax.random.normal(keys[2], (depth, depth, 3, 3), jnp.float32),
        bn2=bn_params(keys[3], depth),
        w_sc=jax.random.normal(keys[4], (depth, in_channel, 1, 1), jnp.float32),
        bn_sc=bn_params(keys[5], depth),
    )


# ---------------------------------------------------------------------------

if __name__ == "__main__":
    key = jax.random.PRNGKey(0)
    N, H, W = 2, 16, 16
    configs = [
        (4, 8, 2),   # conv shortcut + stride-2 downsample
        (8, 8, 1),   # MaxPool/identity shortcut + stride-1
    ]

    for idx, (cin, depth, stride) in enumerate(configs):
        kx, kp = jax.random.split(jax.random.fold_in(key, idx))
        x = jax.random.normal(kx, (N, cin, H, W), jnp.float32)   # NCHW like PyTorch
        params = init_params(kp, cin, depth)

        out = bottleneck_ir_equal_forward(x, params, cin, depth, stride)
        out = jax.block_until_ready(out)
        assert out.shape == (N, depth, H // stride, W // stride), out.shape
        assert bool(jnp.isfinite(out).all())

        ref = reference_forward(x, params, cin, depth, stride)
        err = float(jnp.max(jnp.abs(out - ref)))
        tol = 0.05 * max(1.0, float(jnp.max(jnp.abs(ref))))      # bf16 MXU operands
        assert err < tol, (err, tol)

    print("KERNEL_OK")
</pallas_src>

<mosaic_0001>
module attributes {stable_mosaic.version = 11 : i64} {
  func.func @kernel(%arg0: i32, %arg1: i32, %arg2: i32, %arg3: memref<1x288x12xbf16, #tpu.memory_space<vmem>>, %arg4: memref<3x12x8xbf16, #tpu.memory_space<vmem>>, %arg5: memref<1x8xf32, #tpu.memory_space<vmem>>, %arg6: memref<1x128x8xbf16, #tpu.memory_space<vmem>>) attributes {dimension_semantics = [#tpu.dimension_semantics<parallel>, #tpu.dimension_semantics<parallel>, #tpu.dimension_semantics<parallel>], iteration_bounds = array<i64: 2, 2, 1>, scalar_prefetch = 0 : i64, scratch_operands = 0 : i64, tpu.core_type = #tpu.core_type<tc>, window_params = [{transform_indices = @transform_0, window_bounds = array<i64: 1, 288, 12>}, {transform_indices = @transform_1, window_bounds = array<i64: 3, 12, 8>}, {transform_indices = @transform_2, window_bounds = array<i64: 1, 8>}, {transform_indices = @transform_3, window_bounds = array<i64: 1, 128, 8>}]} {
    %c128_i32 = arith.constant 128 : i32
    %0 = arith.muli %arg1, %c128_i32 : i32
    %1 = tpu.assume_multiple %0, 8 : i32
    %c0_i32 = arith.constant 0 : i32
    %2 = arith.addi %1, %c0_i32 : i32
    %c0 = arith.constant 0 : index
    %3 = arith.index_cast %2 : i32 to index
    %c0_0 = arith.constant 0 : index
    %4 = vector.load %arg3[%c0, %3, %c0_0] : memref<1x288x12xbf16, #tpu.memory_space<vmem>>, vector<1x128x12xbf16>
    %5 = vector.shape_cast %4 : vector<1x128x12xbf16> to vector<128x12xbf16>
    %c0_1 = arith.constant 0 : index
    %c0_2 = arith.constant 0 : index
    %c0_3 = arith.constant 0 : index
    %6 = vector.load %arg4[%c0_1, %c0_2, %c0_3] : memref<3x12x8xbf16, #tpu.memory_space<vmem>>, vector<1x12x8xbf16>
    %7 = vector.shape_cast %6 : vector<1x12x8xbf16> to vector<12x8xbf16>
    %cst = arith.constant dense<0.000000e+00> : vector<128x8xf32>
    %8 = tpu.matmul %5, %7, %cst {dimension_numbers = #tpu.dot_dimension_numbers<[1], [0], [0], [1], [0, 0, 1, 1], [], []>} : vector<128x12xbf16>, vector<12x8xbf16>, vector<128x8xf32> -> vector<128x8xf32>
    %c16_i32 = arith.constant 16 : i32
    %9 = arith.addi %1, %c16_i32 : i32
    %c0_4 = arith.constant 0 : index
    %10 = arith.index_cast %9 : i32 to index
    %c0_5 = arith.constant 0 : index
    %11 = vector.load %arg3[%c0_4, %10, %c0_5] : memref<1x288x12xbf16, #tpu.memory_space<vmem>>, vector<1x128x12xbf16>
    %12 = vector.shape_cast %11 : vector<1x128x12xbf16> to vector<128x12xbf16>
    %c1 = arith.constant 1 : index
    %c0_6 = arith.constant 0 : index
    %c0_7 = arith.constant 0 : index
    %13 = vector.load %arg4[%c1, %c0_6, %c0_7] : memref<3x12x8xbf16, #tpu.memory_space<vmem>>, vector<1x12x8xbf16>
    %14 = vector.shape_cast %13 : vector<1x12x8xbf16> to vector<12x8xbf16>
    %cst_8 = arith.constant dense<0.000000e+00> : vector<128x8xf32>
    %15 = tpu.matmul %12, %14, %cst_8 {dimension_numbers = #tpu.dot_dimension_numbers<[1], [0], [0], [1], [0, 0, 1, 1], [], []>} : vector<128x12xbf16>, vector<12x8xbf16>, vector<128x8xf32> -> vector<128x8xf32>
    %16 = arith.addf %8, %15 : vector<128x8xf32>
    %c32_i32 = arith.constant 32 : i32
    %17 = arith.addi %1, %c32_i32 : i32
    %c0_9 = arith.constant 0 : index
    %18 = arith.index_cast %17 : i32 to index
    %c0_10 = arith.constant 0 : index
    %19 = vector.load %arg3[%c0_9, %18, %c0_10] : memref<1x288x12xbf16, #tpu.memory_space<vmem>>, vector<1x128x12xbf16>
    %20 = vector.shape_cast %19 : vector<1x128x12xbf16> to vector<128x12xbf16>
    %c2 = arith.constant 2 : index
    %c0_11 = arith.constant 0 : index
    %c0_12 = arith.constant 0 : index
    %21 = vector.load %arg4[%c2, %c0_11, %c0_12] : memref<3x12x8xbf16, #tpu.memory_space<vmem>>, vector<1x12x8xbf16>
    %22 = vector.shape_cast %21 : vector<1x12x8xbf16> to vector<12x8xbf16>
    %cst_13 = arith.constant dense<0.000000e+00> : vector<128x8xf32>
    %23 = tpu.matmul %20, %22, %cst_13 {dimension_numbers = #tpu.dot_dimension_numbers<[1], [0], [0], [1], [0, 0, 1, 1], [], []>} : vector<128x12xbf16>, vector<12x8xbf16>, vector<128x8xf32> -> vector<128x8xf32>
    %24 = arith.addf %16, %23 : vector<128x8xf32>
    %cst_14 = arith.constant 0.000000e+00 : f32
    %25 = vector.broadcast %cst_14 : f32 to vector<128x8xf32>
    %26 = arith.cmpf ogt, %24, %25 : vector<128x8xf32>
    %c0_15 = arith.constant 0 : index
    %c0_16 = arith.constant 0 : index
    %27 = vector.load %arg5[%c0_15, %c0_16] : memref<1x8xf32, #tpu.memory_space<vmem>>, vector<1x8xf32>
    %28 = vector.broadcast %27 : vector<1x8xf32> to vector<128x8xf32>
    %29 = arith.mulf %24, %28 : vector<128x8xf32>
    %30 = arith.select %26, %24, %29 : vector<128x8xi1>, vector<128x8xf32>
    %31 = arith.truncf %30 : vector<128x8xf32> to vector<128x8xbf16>
    %32 = vector.shape_cast %31 : vector<128x8xbf16> to vector<1x128x8xbf16>
    %c0_17 = arith.constant 0 : index
    %c0_18 = arith.constant 0 : index
    %c0_19 = arith.constant 0 : index
    %33 = vector.load %arg6[%c0_17, %c0_18, %c0_19] : memref<1x128x8xbf16, #tpu.memory_space<vmem>>, vector<1x128x8xbf16>
    tpu.vector_store %arg6[%c0_17, %c0_18, %c0_19], %32 {strides = array<i32>} : memref<1x128x8xbf16, #tpu.memory_space<vmem>>, vector<1x128x8xbf16>,
    return
  }
  func.func @transform_0(%arg0: i32, %arg1: i32, %arg2: i32) -> (i32, i32, i32) {
    %c0_i32 = arith.constant 0 : i32
    %c0_i32_0 = arith.constant 0 : i32
    %c0_i32_1 = arith.constant 0 : i32
    return %arg0, %c0_i32, %c0_i32_0 : i32, i32, i32
  }
  func.func @transform_1(%arg0: i32, %arg1: i32, %arg2: i32) -> (i32, i32, i32) {
    %c0_i32 = arith.constant 0 : i32
    %c0_i32_0 = arith.constant 0 : i32
    %c0_i32_1 = arith.constant 0 : i32
    return %c0_i32, %c0_i32_0, %arg2 : i32, i32, i32
  }
  func.func @transform_2(%arg0: i32, %arg1: i32, %arg2: i32) -> (i32, i32) {
    %c0_i32 = arith.constant 0 : i32
    %c0_i32_0 = arith.constant 0 : i32
    return %c0_i32, %arg2 : i32, i32
  }
  func.func @transform_3(%arg0: i32, %arg1: i32, %arg2: i32) -> (i32, i32, i32) {
    %c0_i32 = arith.constant 0 : i32
    return %arg0, %arg1, %arg2 : i32, i32, i32
  }
}

module attributes {stable_mosaic.version = 11 : i64} {
  func.func @kernel(%arg0: i32, %arg1: i32, %arg2: i32, %arg3: memref<1x72x24xbf16, #tpu.memory_space<vmem>>, %arg4: memref<1x72x24xbf16, #tpu.memory_space<vmem>>, %arg5: memref<3x24x8xbf16, #tpu.memory_space<vmem>>, %arg6: memref<1x8xf32, #tpu.memory_space<vmem>>, %arg7: memref<1x8xf32, #tpu.memory_space<vmem>>, %arg8: memref<1x32x4xbf16, #tpu.memory_space<vmem>>, %arg9: memref<4x8xbf16, #tpu.memory_space<vmem>>, %arg10: memref<1x8xf32, #tpu.memory_space<vmem>>, %arg11: memref<1x8xf32, #tpu.memory_space<vmem>>, %arg12: memref<1x32x8xf32, #tpu.memory_space<vmem>>) attributes {dimension_semantics = [#tpu.dimension_semantics<parallel>, #tpu.dimension_semantics<parallel>, #tpu.dimension_semantics<parallel>], iteration_bounds = array<i64: 2, 2, 1>, scalar_prefetch = 0 : i64, scratch_operands = 0 : i64, tpu.core_type = #tpu.core_type<tc>, window_params = [{transform_indices = @transform_0, window_bounds = array<i64: 1, 72, 24>}, {transform_indices = @transform_1, window_bounds = array<i64: 1, 72, 24>}, {transform_indices = @transform_2, window_bounds = array<i64: 3, 24, 8>}, {transform_indices = @transform_3, window_bounds = array<i64: 1, 8>}, {transform_indices = @transform_4, window_bounds = array<i64: 1, 8>}, {transform_indices = @transform_5, window_bounds = array<i64: 1, 32, 4>}, {transform_indices = @transform_6, window_bounds = array<i64: 4, 8>}, {transform_indices = @transform_7, window_bounds = array<i64: 1, 8>}, {transform_indices = @transform_8, window_bounds = array<i64: 1, 8>}, {transform_indices = @transform_9, window_bounds = array<i64: 1, 32, 8>}]} {
    %c32_i32 = arith.constant 32 : i32
    %0 = arith.muli %arg1, %c32_i32 : i32
    %1 = tpu.assume_multiple %0, 8 : i32
    %c0_i32 = arith.constant 0 : i32
    %2 = arith.addi %1, %c0_i32 : i32
    %c0 = arith.constant 0 : index
    %3 = arith.index_cast %2 : i32 to index
    %c0_0 = arith.constant 0 : index
    %4 = vector.load %arg3[%c0, %3, %c0_0] : memref<1x72x24xbf16, #tpu.memory_space<vmem>>, vector<1x32x24xbf16>
    %5 = vector.shape_cast %4 : vector<1x32x24xbf16> to vector<32x24xbf16>
    %c0_1 = arith.constant 0 : index
    %c0_2 = arith.constant 0 : index
    %c0_3 = arith.constant 0 : index
    %6 = vector.load %arg5[%c0_1, %c0_2, %c0_3] : memref<3x24x8xbf16, #tpu.memory_space<vmem>>, vector<1x24x8xbf16>
    %7 = vector.shape_cast %6 : vector<1x24x8xbf16> to vector<24x8xbf16>
    %cst = arith.constant dense<0.000000e+00> : vector<32x8xf32>
    %8 = tpu.matmul %5, %7, %cst {dimension_numbers = #tpu.dot_dimension_numbers<[1], [0], [0], [1], [0, 0, 1, 1], [], []>} : vector<32x24xbf16>, vector<24x8xbf16>, vector<32x8xf32> -> vector<32x8xf32>
    %c0_i32_4 = arith.constant 0 : i32
    %9 = arith.addi %1, %c0_i32_4 : i32
    %c0_5 = arith.constant 0 : index
    %10 = arith.index_cast %9 : i32 to index
    %c0_6 = arith.constant 0 : index
    %11 = vector.load %arg4[%c0_5, %10, %c0_6] : memref<1x72x24xbf16, #tpu.memory_space<vmem>>, vector<1x32x24xbf16>
    %12 = vector.shape_cast %11 : vector<1x32x24xbf16> to vector<32x24xbf16>
    %c1 = arith.constant 1 : index
    %c0_7 = arith.constant 0 : index
    %c0_8 = arith.constant 0 : index
    %13 = vector.load %arg5[%c1, %c0_7, %c0_8] : memref<3x24x8xbf16, #tpu.memory_space<vmem>>, vector<1x24x8xbf16>
    %14 = vector.shape_cast %13 : vector<1x24x8xbf16> to vector<24x8xbf16>
    %cst_9 = arith.constant dense<0.000000e+00> : vector<32x8xf32>
    %15 = tpu.matmul %12, %14, %cst_9 {dimension_numbers = #tpu.dot_dimension_numbers<[1], [0], [0], [1], [0, 0, 1, 1], [], []>} : vector<32x24xbf16>, vector<24x8xbf16>, vector<32x8xf32> -> vector<32x8xf32>
    %16 = arith.addf %8, %15 : vector<32x8xf32>
    %c8_i32 = arith.constant 8 : i32
    %17 = arith.addi %1, %c8_i32 : i32
    %c0_10 = arith.constant 0 : index
    %18 = arith.index_cast %17 : i32 to index
    %c0_11 = arith.constant 0 : index
    %19 = vector.load %arg3[%c0_10, %18, %c0_11] : memref<1x72x24xbf16, #tpu.memory_space<vmem>>, vector<1x32x24xbf16>
    %20 = vector.shape_cast %19 : vector<1x32x24xbf16> to vector<32x24xbf16>
    %c2 = arith.constant 2 : index
    %c0_12 = arith.constant 0 : index
    %c0_13 = arith.constant 0 : index
    %21 = vector.load %arg5[%c2, %c0_12, %c0_13] : memref<3x24x8xbf16, #tpu.memory_space<vmem>>, vector<1x24x8xbf16>
    %22 = vector.shape_cast %21 : vector<1x24x8xbf16> to vector<24x8xbf16>
    %cst_14 = arith.constant dense<0.000000e+00> : vector<32x8xf32>
    %23 = tpu.matmul %20, %22, %cst_14 {dimension_numbers = #tpu.dot_dimension_numbers<[1], [0], [0], [1], [0, 0, 1, 1], [], []>} : vector<32x24xbf16>, vector<24x8xbf16>, vector<32x8xf32> -> vector<32x8xf32>
    %24 = arith.addf %16, %23 : vector<32x8xf32>
    %c0_15 = arith.constant 0 : index
    %c0_16 = arith.constant 0 : index
    %25 = vector.load %arg6[%c0_15, %c0_16] : memref<1x8xf32, #tpu.memory_space<vmem>>, vector<1x8xf32>
    %26 = vector.broadcast %25 : vector<1x8xf32> to vector<32x8xf32>
    %27 = arith.mulf %24, %26 : vector<32x8xf32>
    %c0_17 = arith.constant 0 : index
    %c0_18 = arith.constant 0 : index
    %28 = vector.load %arg7[%c0_17, %c0_18] : memref<1x8xf32, #tpu.memory_space<vmem>>, vector<1x8xf32>
    %29 = vector.broadcast %28 : vector<1x8xf32> to vector<32x8xf32>
    %30 = arith.addf %27, %29 : vector<32x8xf32>
    %c0_19 = arith.constant 0 : index
    %c0_20 = arith.constant 0 : index
    %c0_21 = arith.constant 0 : index
    %31 = vector.load %arg8[%c0_19, %c0_20, %c0_21] : memref<1x32x4xbf16, #tpu.memory_space<vmem>>, vector<1x32x4xbf16>
    %32 = vector.shape_cast %31 : vector<1x32x4xbf16> to vector<32x4xbf16>
    %c0_22 = arith.constant 0 : index
    %c0_23 = arith.constant 0 : index
    %33 = vector.load %arg9[%c0_22, %c0_23] : memref<4x8xbf16, #tpu.memory_space<vmem>>, vector<4x8xbf16>
    %cst_24 = arith.constant dense<0.000000e+00> : vector<32x8xf32>
    %34 = tpu.matmul %32, %33, %cst_24 {dimension_numbers = #tpu.dot_dimension_numbers<[1], [0], [0], [1], [0, 0, 1, 1], [], []>} : vector<32x4xbf16>, vector<4x8xbf16>, vector<32x8xf32> -> vector<32x8xf32>
    %c0_25 = arith.constant 0 : index
    %c0_26 = arith.constant 0 : index
    %35 = vector.load %arg10[%c0_25, %c0_26] : memref<1x8xf32, #tpu.memory_space<vmem>>, vector<1x8xf32>
    %36 = vector.broadcast %35 : vector<1x8xf32> to vector<32x8xf32>
    %37 = arith.mulf %34, %36 : vector<32x8xf32>
    %c0_27 = arith.constant 0 : index
    %c0_28 = arith.constant 0 : index
    %38 = vector.load %arg11[%c0_27, %c0_28] : memref<1x8xf32, #tpu.memory_space<vmem>>, vector<1x8xf32>
    %39 = vector.broadcast %38 : vector<1x8xf32> to vector<32x8xf32>
    %40 = arith.addf %37, %39 : vector<32x8xf32>
    %41 = arith.addf %30, %40 : vector<32x8xf32>
    %42 = vector.shape_cast %41 : vector<32x8xf32> to vector<1x32x8xf32>
    %c0_29 = arith.constant 0 : index
    %c0_30 = arith.constant 0 : index
    %c0_31 = arith.constant 0 : index
    %43 = vector.load %arg12[%c0_29, %c0_30, %c0_31] : memref<1x32x8xf32, #tpu.memory_space<vmem>>, vector<1x32x8xf32>
    tpu.vector_store %arg12[%c0_29, %c0_30, %c0_31], %42 {strides = array<i32>} : memref<1x32x8xf32, #tpu.memory_space<vmem>>, vector<1x32x8xf32>,
    return
  }
  func.func @transform_0(%arg0: i32, %arg1: i32, %arg2: i32) -> (i32, i32, i32) {
    %c0_i32 = arith.constant 0 : i32
    %c0_i32_0 = arith.constant 0 : i32
    %c0_i32_1 = arith.constant 0 : i32
    return %arg0, %c0_i32, %c0_i32_0 : i32, i32, i32
  }
  func.func @transform_1(%arg0: i32, %arg1: i32, %arg2: i32) -> (i32, i32, i32) {
    %c0_i32 = arith.constant 0 : i32
    %c0_i32_0 = arith.constant 0 : i32
    %c0_i32_1 = arith.constant 0 : i32
    return %arg0, %c0_i32, %c0_i32_0 : i32, i32, i32
  }
  func.func @transform_2(%arg0: i32, %arg1: i32, %arg2: i32) -> (i32, i32, i32) {
    %c0_i32 = arith.constant 0 : i32
    %c0_i32_0 = arith.constant 0 : i32
    %c0_i32_1 = arith.constant 0 : i32
    return %c0_i32, %c0_i32_0, %arg2 : i32, i32, i32
  }
  func.func @transform_3(%arg0: i32, %arg1: i32, %arg2: i32) -> (i32, i32) {
    %c0_i32 = arith.constant 0 : i32
    %c0_i32_0 = arith.constant 0 : i32
    return %c0_i32, %arg2 : i32, i32
  }
  func.func @transform_4(%arg0: i32, %arg1: i32, %arg2: i32) -> (i32, i32) {
    %c0_i32 = arith.constant 0 : i32
    %c0_i32_0 = arith.constant 0 : i32
    return %c0_i32, %arg2 : i32, i32
  }
  func.func @transform_5(%arg0: i32, %arg1: i32, %arg2: i32) -> (i32, i32, i32) {
    %c0_i32 = arith.constant 0 : i32
    %c0_i32_0 = arith.constant 0 : i32
    return %arg0, %arg1, %c0_i32 : i32, i32, i32
  }
  func.func @transform_6(%arg0: i32, %arg1: i32, %arg2: i32) -> (i32, i32) {
    %c0_i32 = arith.constant 0 : i32
    %c0_i32_0 = arith.constant 0 : i32
    return %c0_i32, %arg2 : i32, i32
  }
  func.func @transform_7(%arg0: i32, %arg1: i32, %arg2: i32) -> (i32, i32) {
    %c0_i32 = arith.constant 0 : i32
    %c0_i32_0 = arith.constant 0 : i32
    return %c0_i32, %arg2 : i32, i32
  }
  func.func @transform_8(%arg0: i32, %arg1: i32, %arg2: i32) -> (i32, i32) {
    %c0_i32 = arith.constant 0 : i32
    %c0_i32_0 = arith.constant 0 : i32
    return %c0_i32, %arg2 : i32, i32
  }
  func.func @transform_9(%arg0: i32, %arg1: i32, %arg2: i32) -> (i32, i32, i32) {
    %c0_i32 = arith.constant 0 : i32
    return %arg0, %arg1, %arg2 : i32, i32, i32
  }
}

</mosaic_0001>

<bundles_post_ra>
// kernel: bottleneck_ir_equal_forward.2
= control target key start
LH: loop header
LB: loop body
LE: loop exit
PB: predicated region body
PF: predicated region fallthrough
CT: control target
= control target key end

     0   :  { %s1423_s12 = smov 0   ;;  %s1425_s13 = smov 0   ;;  %s1629_s0 = inlined_call_operand.vmem [shape: bf16[2,288,12], index: 0, kind: input, shape index: {}]   ;;  %s1630_s1 = inlined_call_operand.vmem [shape: bf16[3,12,8], index: 1, kind: input, shape index: {}]   ;;  %s1631_s2 = inlined_call_operand.vmem [shape: f32[1,8], index: 2, kind: input, shape index: {}]   ;;  %s1632_s3 = inlined_call_operand.vmem [shape: bf16[2,256,8], index: 3, kind: output, shape index: {}]  }
   0x1   :  { %s1427_s14 = smov 0   ;;  %s1429_s15 = smov 0  }
   0x2   :  { %s1431_s16 = smov 0  }
   0x3 LB: > { %s28_s17 = sadd.s32 1, %s1393_s14  ;;  %s32_s18 = sadd.s32 1, %s1397_s15  ;;  %s1401_s16 = sphi %s1431_s16, %s13_s16   ;;  %s1397_s15 = sphi %s1429_s15, %s1636_s15   ;;  %s1393_s14 = sphi %s1427_s14, %s1635_s14   ;;  %s1389_s13 = sphi %s1425_s13, %s1634_s13   ;;  %s1385_s12 = sphi %s1423_s12, %s1633_s12  }
   0x4   : > { %p30_p0 = scmp.ge.s32.totalorder %s28_s17, 2  ;;  %p1109_p1 = scmp.ge.s32.totalorder %s1401_s16, 1 }
   0x5   : > { %p177_p2 = scmp.lt.s32.totalorder %s1401_s16, 5 }
   0x6   : > { %s1638_s17 = smov (%p30_p0, %s28_s17), 0  ;;  %s1640_s18 = smov (!%p30_p0, %s32_s18), %s1397_s15 }
   0x7   : > { %p178_p3 = pnand %p1109_p1, %p177_p2  ;;  %p34_p4 = scmp.ge.s32.totalorder %s1640_s18, 2 }
   0x8   : > { %p215_p5 = scmp.lt.s32.totalorder (!%p178_p3), %s1389_s13, 1  ;;  %s1459_s21 = sshll.u32 (!%p178_p3), %s1385_s12, 7 }
   0x9   : > { %s1642_s18 = smov (%p34_p4, %s1640_s18), 0  ;;  %181 = sbr.rel (%p178_p3) target bundleno = 272 (0x110), region = 32 }
   0xa   : > { %s264_s22 = sadd.s32 (!%p178_p3), 16, %s1459_s21  ;;  %s628_s30 = sadd.s32 (!%p178_p3), 32, %s1459_s21 }
   0xb   : > { %s265_s25 = sshra.s32 (!%p178_p3), %s264_s22, 3  ;;  %s242_s7 = sshra.s32 (!%p178_p3), %s1459_s21, 3 }
   0xc   : > { %s1116_s29 = sshll.u32 (!%p178_p3), %s265_s25, 2  ;;  %s629_s9 = sshra.s32 (!%p178_p3), %s628_s30, 3 }
   0xd   : > { %s1153_s10 = sshll.u32 (!%p178_p3), %s629_s9, 2  ;;  %s1115_s11 = sshll.u32 (!%p178_p3), %s242_s7, 2 }
   0xe   : > { %v1336_v0 = vld [vmem:[%s1630_s1 + $0x8] sm:$0x3f]   ;;  %vm358_vm0 = vcmask 1045504   ;;  %s1644_s13 = smov (!%p215_p5, %s1389_s13), 1  ;;  %v1339_v2 = vld [vmem:[%s1630_s1] sm:$0x3f]  }
   0xf   : > { %1292 = vmatprep.subr.msk.bf16.mxu1 %vm358_vm0, %v1336_v0  ;;  %1291 = vmatprep.subr.msk.bf16.mxu0 %vm358_vm0, %v1336_v0  ;;  %v360_v1 = vsel %vm358_vm0, %v1336_v0, 0  ;;  %v1342_v3 = vld [vmem:[%s1630_s1 + $0x10] sm:$0x3f]   ;;  %s1295_s28 = smul.u32 144, %s1644_s13  ;;  %vm333_vm1 = vcmask 97280   ;;  %v529_v6 = vsel %vm358_vm0, %v1339_v2, 0 }
  0x10   : > { %1290 = vmatpush3.bf16.msra.mxu1 %v360_v1  ;;  %1236 = vmatpush3.bf16.msra.mxu0 %v360_v1  ;;  %v722_v8 = vsel %vm358_vm0, %v1342_v3, 0  ;;  %s1111_s21 = sshll.u32 %s1385_s12, 4  ;;  %s1112_s22 = sshll.u32 %s1644_s13, 5  ;;  %v1550_v50 = vld [vmem:[%s1631_s2] ss:$0 sm:$0xff]  ;;  %vm956_vm3 = vcmask 60416  }
  0x11   : > { %1293 = vmatprep.subr.msk.bf16.mxu1 %vm358_vm0, %v1339_v2  ;;  %1294 = vmatprep.subr.msk.bf16.mxu0 %vm358_vm0, %v1342_v3  ;;  %s219_s6 = scalar_lea.vmem %s1629_s0, %s1295_s28  ;;  %p230_p6 = scmp.lt.s32.totalorder %s1111_s21, 31 }
  0x12   : > { %s268_s8 = scalar_lea.vmem %s219_s6, %s1116_s29  ;;  %s1487_s19 = scalar_lea.vmem %s219_s6, %s1153_s10 }
  0x13   : > { %v1337_v4 = vld [vmem:[%s268_s8] sm:$0xff]   ;;  %v1340_v7 = vld [vmem:[%s268_s8 + $0x8] sm:$0xff]   ;;  %v1343_v10 = vld [vmem:[%s268_s8 + $0x10] sm:$0xff]   ;;  %s1490_s20 = scalar_lea.vmem %s219_s6, %s1115_s11  ;;  %s1646_s21 = smov (!%p230_p6, %s1111_s21), 31 }
  0x14   : > { %v1338_v5 = vld [vmem:[%s268_s8 + $0x20] sm:$0xff]   ;;  %1237 = vmatprep.mubr.msk.bf16.mxu0 %vm333_vm1, %v1337_v4  ;;  %v1341_v9 = vld [vmem:[%s268_s8 + $0x28] sm:$0xff]   ;;  %v1344_v11 = vld [vmem:[%s268_s8 + $0x30] sm:$0xff]   ;;  %s236_s12 = sadd.s32 %s1112_s22, %s1646_s21 }
  0x15   : > { %1245 = vmatprep.mubr.msk.bf16.mxu1 %vm333_vm1, %v1338_v5  ;;  %1238 = vmatmul.mubr.msk.bf16.vlgmr.msra.gmra.mxu0 %vm333_vm1, %v1340_v7  ;;  %v1345_v12 = vld [vmem:[%s268_s8 + $0x18] sm:$0xff]   ;;  %v1348_v14 = vld [vmem:[%s1487_s19] sm:$0xff]   ;;  %v1349_v16 = vld [vmem:[%s1490_s20 + $0x8] sm:$0xff]   ;;  %s1113_s25 = sshll.u32 %s236_s12, 2 }
  0x16   : > { %1246 = vmatmul.mubr.msk.bf16.vlgmr.msra.gmra.mxu1 %vm333_vm1, %v1341_v9  ;;  %1272 = vmatpush3.bf16.msra.mxu0 %v722_v8  ;;  %v1346_v13 = vld [vmem:[%s268_s8 + $0x38] sm:$0xff]   ;;  %v1347_v15 = vld [vmem:[%s1490_s20] sm:$0xff]   ;;  %v1350_v17 = vld [vmem:[%s1487_s19 + $0x8] sm:$0xff]   ;;  %s1556_s27 = scalar_lea.vmem %s1632_s3, %s1113_s25 }
  0x17   : > { %1254 = vmatpush3.bf16.msra.mxu1 %v529_v6  ;;  %1241 = vmatprep.mubr.msk.bf16.mxu0 %vm333_vm1, %v1343_v10  ;;  %v1352_v18 = vld [vmem:[%s1487_s19 + $0x10] sm:$0xff]   ;;  %v1354_v20 = vld [vmem:[%s1487_s19 + $0x18] sm:$0xff]   ;;  %v1356_v22 = vld [vmem:[%s1487_s19 + $0x20] sm:$0xff]  }
  0x18   : > { %1249 = vmatprep.mubr.msk.bf16.mxu1 %vm333_vm1, %v1344_v11  ;;  %v1351_v19 = vld [vmem:[%s1490_s20 + $0x10] sm:$0xff]   ;;  %v1353_v21 = vld [vmem:[%s1490_s20 + $0x18] sm:$0xff]   ;;  %v1355_v23 = vld [vmem:[%s1490_s20 + $0x20] sm:$0xff]  }
  0x19   : > { %v1358_v24 = vld [vmem:[%s1487_s19 + $0x28] sm:$0xff]   ;;  %v1360_v26 = vld [vmem:[%s1487_s19 + $0x30] sm:$0xff]   ;;  %v1362_v28 = vld [vmem:[%s1487_s19 + $0x38] sm:$0xff]  }
  0x1a   : > { %v1357_v25 = vld [vmem:[%s1490_s20 + $0x28] sm:$0xff]   ;;  %v1359_v27 = vld [vmem:[%s1490_s20 + $0x30] sm:$0xff]   ;;  %v1361_v29 = vld [vmem:[%s1490_s20 + $0x38] sm:$0xff]  }
  0x1d   : > { %1242 = vmatmul.mubr.msk.bf16.gmra.mxu0 %vm333_vm1, %v1345_v12 }
  0x1e   : > { %1250 = vmatmul.mubr.msk.bf16.gmra.mxu1 %vm333_vm1, %v1346_v13  ;;  %1273 = vmatprep.mubr.msk.bf16.mxu0 %vm333_vm1, %v1348_v14 }
  0x1f   : > { %1255 = vmatprep.mubr.msk.bf16.mxu1 %vm333_vm1, %v1347_v15 }
  0x25   : > { %1274 = vmatmul.mubr.msk.bf16.vlgmr.msra.gmra.mxu0 %vm333_vm1, %v1350_v17 }
  0x26   : > { %1256 = vmatmul.mubr.msk.bf16.vlgmr.msra.gmra.mxu1 %vm333_vm1, %v1349_v16  ;;  %1277 = vmatprep.mubr.msk.bf16.mxu0 %vm333_vm1, %v1352_v18 }
  0x27   : > { %1259 = vmatprep.mubr.msk.bf16.mxu1 %vm333_vm1, %v1351_v19 }
  0x2d   : > { %1278 = vmatmul.mubr.msk.bf16.gmra.mxu0 %vm333_vm1, %v1354_v20 }
  0x2e   : > { %1260 = vmatmul.mubr.msk.bf16.gmra.mxu1 %vm333_vm1, %v1353_v21  ;;  %1281 = vmatprep.mubr.msk.bf16.mxu0 %vm333_vm1, %v1356_v22 }
  0x2f   : > { %1263 = vmatprep.mubr.msk.bf16.mxu1 %vm333_vm1, %v1355_v23 }
  0x35   : > { %1282 = vmatmul.mubr.msk.bf16.gmra.mxu0 %vm333_vm1, %v1358_v24 }
  0x36   : > { %1264 = vmatmul.mubr.msk.bf16.gmra.mxu1 %vm333_vm1, %v1357_v25  ;;  %1285 = vmatprep.mubr.msk.bf16.mxu0 %vm333_vm1, %v1360_v26 }
  0x37   : > { %1267 = vmatprep.mubr.msk.bf16.mxu1 %vm333_vm1, %v1359_v27 }
  0x3d   : > { %1286 = vmatmul.mubr.msk.bf16.gmra.mxu0 %vm333_vm1, %v1362_v28 }
  0x3e   : > { %1268 = vmatmul.mubr.msk.bf16.gmra.mxu1 %vm333_vm1, %v1361_v29 }
  0xd5   : > { %v1239_v30 = vpop.f32.mrf.mxu0 }
  0xd6   : > { %v1527_v31 = vpop.f32.mrf.mxu1 }
  0xd7   : > { %v396_v32 = vpop.f32.mrf.mxu0 }
  0xd8   : > { %v1529_v33 = vpop.f32.mrf.mxu1 }
  0xd9   : > { %v1240_v34 = vpop.f32.mrf.mxu0 }
  0xda   : > { %v1531_v35 = vpop.f32.mrf.mxu1 }
  0xdb   : > { %v399_v36 = vpop.f32.mrf.mxu0 }
  0xdc   : > { %v1533_v37 = vpop.f32.mrf.mxu1 }
  0xdd   : > { %v1243_v38 = vpop.f32.mrf.mxu0 }
  0xde   : > { %v1536_v39 = vpop.f32.mrf.mxu1 }
  0xdf   : > { %v412_v40 = vpop.f32.mrf.mxu0 }
  0xe0   : > { %v1538_v41 = vpop.f32.mrf.mxu1 }
  0xe1   : > { %v1244_v42 = vpop.f32.mrf.mxu0 }
  0xe2   : > { %v1540_v43 = vpop.f32.mrf.mxu1 }
  0xe3   : > { %v1542_v44 = vpop.f32.mrf.mxu0 }
  0xe4   : > { %v1545_v45 = vpop.f32.mrf.mxu1 }
  0xe5   : > { %v1275_v46 = vpop.f32.mrf.mxu0 }
  0xe6   : > { %v1257_v47 = vpop.f32.mrf.mxu1 }
  0xe7   : > { %v574_v48 = vadd.f32 %v1257_v47, %v1239_v30  ;;  %v758_v49 = vpop.f32.mrf.mxu0 }
  0xe8   : > { %v565_v51 = vpop.f32.mrf.mxu1 }
  0xe9   : > { %v823_v52 = vadd.f32 %v1275_v46, %v574_v48  ;;  %v566_v53 = vadd.f32 %v565_v51, %v396_v32  ;;  %v1276_v54 = vpop.f32.mrf.mxu0 }
  0xea   : > { %v1258_v55 = vpop.f32.mrf.mxu1 }
  0xeb   : > { %vm839_vm2 = vcmp.gt.f32.partialorder %v823_v52, 0.0  ;;  %v862_v56 = vmul.f32 %v1550_v50, %v823_v52  ;;  %v821_v57 = vadd.f32 %v758_v49, %v566_v53  ;;  %v577_v58 = vadd.f32 %v1258_v55, %v1240_v34  ;;  %v761_v59 = vpop.f32.mrf.mxu0 }
  0xec   : > { %v568_v60 = vpop.f32.mrf.mxu1 }
  0xed   : > { %v878_v61 = vsel %vm839_vm2, %v823_v52, %v862_v56  ;;  %vm837_vm4 = vcmp.gt.f32.partialorder %v821_v57, 0.0  ;;  %v860_v62 = vmul.f32 %v1550_v50, %v821_v57  ;;  %v824_v63 = vadd.f32 %v1276_v54, %v577_v58  ;;  %v1279_v0 = vpop.f32.mrf.mxu0 }
  0xee   : > { %v1194_v1 = vpack.c.bf16 %v878_v61, %v878_v61  ;;  %v569_v2 = vadd.f32 %v568_v60, %v399_v36  ;;  %v1261_v3 = vpop.f32.mrf.mxu1 }
  0xef   : > { %v876_v4 = vsel %vm837_vm4, %v821_v57, %v860_v62  ;;  %vm840_vm5 = vcmp.gt.f32.partialorder %v824_v63, 0.0  ;;  %v863_v5 = vmul.f32 %v1550_v50, %v824_v63  ;;  %v590_v6 = vadd.f32 %v1261_v3, %v1243_v38  ;;  %v774_v7 = vpop.f32.mrf.mxu0 }
  0xf0   : > { %959 = vst.msk [vmem:[%s1556_s27 + $0x8] sm:$0xf] %vm956_vm3, %v1194_v1  ;;  %v1192_v8 = vpack.c.bf16 %v876_v4, %v876_v4  ;;  %v822_v9 = vadd.f32 %v761_v59, %v569_v2  ;;  %v581_v10 = vpop.f32.mrf.mxu1 }
  0xf1   : > { %v879_v11 = vsel %vm840_vm5, %v824_v63, %v863_v5  ;;  %v827_v12 = vadd.f32 %v1279_v0, %v590_v6  ;;  %v582_v13 = vadd.f32 %v581_v10, %v412_v40  ;;  %v1280_v14 = vpop.f32.mrf.mxu0 }
  0xf2   : > { %957 = vst.msk [vmem:[%s1556_s27] sm:$0xf] %vm956_vm3, %v1192_v8  ;;  %v1195_v15 = vpack.c.bf16 %v879_v11, %v879_v11  ;;  %vm838_vm6 = vcmp.gt.f32.partialorder %v822_v9, 0.0  ;;  %v861_v16 = vmul.f32 %v1550_v50, %v822_v9  ;;  %v1262_v17 = vpop.f32.mrf.mxu1 }
  0xf3   : > { %vm843_vm7 = vcmp.gt.f32.partialorder %v827_v12, 0.0  ;;  %v866_v18 = vmul.f32 %v1550_v50, %v827_v12  ;;  %v825_v19 = vadd.f32 %v774_v7, %v582_v13  ;;  %v593_v20 = vadd.f32 %v1262_v17, %v1244_v42  ;;  %v777_v21 = vpop.f32.mrf.mxu0 }
  0xf4   : > { %960 = vst.msk [vmem:[%s1556_s27 + $0xc] sm:$0xf] %vm956_vm3, %v1195_v15  ;;  %v877_v22 = vsel %vm838_vm6, %v822_v9, %v861_v16  ;;  %v584_v23 = vpop.f32.mrf.mxu1 }
  0xf5   : > { %v1193_v24 = vpack.c.bf16 %v877_v22, %v877_v22  ;;  %v882_v25 = vsel %vm843_vm7, %v827_v12, %v866_v18  ;;  %vm841_vm8 = vcmp.gt.f32.partialorder %v825_v19, 0.0  ;;  %v864_v26 = vmul.f32 %v1550_v50, %v825_v19  ;;  %v1283_v27 = vpop.f32.mrf.mxu0 }
  0xf6   : > { %v1198_v28 = vpack.c.bf16 %v882_v25, %v882_v25  ;;  %v828_v29 = vadd.f32 %v1280_v14, %v593_v20  ;;  %v585_v30 = vadd.f32 %v584_v23, %v1542_v44  ;;  %v1265_v32 = vpop.f32.mrf.mxu1 }
  0xf7   : > { %958 = vst.msk [vmem:[%s1556_s27 + $0x4] sm:$0xf] %vm956_vm3, %v1193_v24  ;;  %v880_v34 = vsel %vm841_vm8, %v825_v19, %v864_v26  ;;  %v606_v36 = vadd.f32 %v1265_v32, %v1527_v31  ;;  %v790_v38 = vpop.f32.mrf.mxu0 }
  0xf8   : > { %963 = vst.msk [vmem:[%s1556_s27 + $0x18] sm:$0xf] %vm956_vm3, %v1198_v28  ;;  %v1196_v40 = vpack.c.bf16 %v880_v34, %v880_v34  ;;  %vm844_vm9 = vcmp.gt.f32.partialorder %v828_v29, 0.0  ;;  %v867_v42 = vmul.f32 %v1550_v50, %v828_v29  ;;  %v826_v46 = vadd.f32 %v777_v21, %v585_v30  ;;  %v597_v47 = vpop.f32.mrf.mxu1 }
  0xf9   : > { %v831_v48 = vadd.f32 %v1283_v27, %v606_v36  ;;  %v598_v49 = vadd.f32 %v597_v47, %v1529_v33  ;;  %v1284_v44 = vpop.f32.mrf.mxu0 }
  0xfa   : > { %961 = vst.msk [vmem:[%s1556_s27 + $0x10] sm:$0xf] %vm956_vm3, %v1196_v40  ;;  %v883_v51 = vsel %vm844_vm9, %v828_v29, %v867_v42  ;;  %vm842_vm10 = vcmp.gt.f32.partialorder %v826_v46, 0.0  ;;  %v865_v31 = vmul.f32 %v1550_v50, %v826_v46  ;;  %v1266_v52 = vpop.f32.mrf.mxu1 }
  0xfb   : > { %v1199_v53 = vpack.c.bf16 %v883_v51, %v883_v51  ;;  %vm847_vm11 = vcmp.gt.f32.partialorder %v831_v48, 0.0  ;;  %v870_v54 = vmul.f32 %v1550_v50, %v831_v48  ;;  %v829_v55 = vadd.f32 %v790_v38, %v598_v49  ;;  %v793_v56 = vpop.f32.mrf.mxu0 }
  0xfc   : > { %v881_v57 = vsel %vm842_vm10, %v826_v46, %v865_v31  ;;  %v609_v58 = vadd.f32 %v1266_v52, %v1531_v35  ;;  %v600_v33 = vpop.f32.mrf.mxu1 }
  0xfd   : > { %964 = vst.msk [vmem:[%s1556_s27 + $0x1c] sm:$0xf] %vm956_vm3, %v1199_v53  ;;  %v1197_v59 = vpack.c.bf16 %v881_v57, %v881_v57  ;;  %v886_v60 = vsel %vm847_vm11, %v831_v48, %v870_v54  ;;  %vm845_vm12 = vcmp.gt.f32.partialorder %v829_v55, 0.0  ;;  %v868_v61 = vmul.f32 %v1550_v50, %v829_v55  ;;  %v1287_v62 = vpop.f32.mrf.mxu0 }
  0xfe   : > { %v1202_v63 = vpack.c.bf16 %v886_v60, %v886_v60  ;;  %v832_v0 = vadd.f32 %v1284_v44, %v609_v58  ;;  %v601_v1 = vadd.f32 %v600_v33, %v1533_v37  ;;  %v1269_v2 = vpop.f32.mrf.mxu1 }
  0xff   : > { %962 = vst.msk [vmem:[%s1556_s27 + $0x14] sm:$0xf] %vm956_vm3, %v1197_v59  ;;  %v884_v3 = vsel %vm845_vm12, %v829_v55, %v868_v61  ;;  %v622_v35 = vadd.f32 %v1269_v2, %v1536_v39  ;;  %v806_v4 = vpop.f32.mrf.mxu0 }
 0x100   : > { %967 = vst.msk [vmem:[%s1556_s27 + $0x28] sm:$0xf] %vm956_vm3, %v1202_v63  ;;  %v1200_v5 = vpack.c.bf16 %v884_v3, %v884_v3  ;;  %vm848_vm13 = vcmp.gt.f32.partialorder %v832_v0, 0.0  ;;  %v871_v6 = vmul.f32 %v1550_v50, %v832_v0  ;;  %v830_v7 = vadd.f32 %v793_v56, %v601_v1  ;;  %v613_v8 = vpop.f32.mrf.mxu1 }
 0x101   : > { %v835_v9 = vadd.f32 %v1287_v62, %v622_v35  ;;  %v614_v10 = vadd.f32 %v613_v8, %v1538_v41  ;;  %v1288_v15 = vpop.f32.mrf.mxu0 }
 0x102   : > { %965 = vst.msk [vmem:[%s1556_s27 + $0x20] sm:$0xf] %vm956_vm3, %v1200_v5  ;;  %v887_v37 = vsel %vm848_vm13, %v832_v0, %v871_v6  ;;  %vm846_vm14 = vcmp.gt.f32.partialorder %v830_v7, 0.0  ;;  %v869_v11 = vmul.f32 %v1550_v50, %v830_v7  ;;  %v1270_v39 = vpop.f32.mrf.mxu1 }
 0x103   : > { %v1203_v12 = vpack.c.bf16 %v887_v37, %v887_v37  ;;  %vm851_vm15 = vcmp.gt.f32.partialorder %v835_v9, 0.0  ;;  %v874_v13 = vmul.f32 %v1550_v50, %v835_v9  ;;  %v833_v14 = vadd.f32 %v806_v4, %v614_v10  ;;  %v809_v25 = vpop.f32.mrf.mxu0 }
 0x104   : > { %v885_v16 = vsel %vm846_vm14, %v830_v7, %v869_v11  ;;  %v625_v17 = vadd.f32 %v1270_v39, %v1540_v43  ;;  %v616_v18 = vpop.f32.mrf.mxu1 }
 0x105   : > { %968 = vst.msk [vmem:[%s1556_s27 + $0x2c] sm:$0xf] %vm956_vm3, %v1203_v12  ;;  %v1201_v41 = vpack.c.bf16 %v885_v16, %v885_v16  ;;  %v890_v19 = vsel %vm851_vm15, %v835_v9, %v874_v13  ;;  %vm849_vm0 = vcmp.gt.f32.partialorder %v833_v14, 0.0  ;;  %v872_v20 = vmul.f32 %v1550_v50, %v833_v14 }
 0x106   : > { %v1206_v21 = vpack.c.bf16 %v890_v19, %v890_v19  ;;  %v836_v22 = vadd.f32 %v1288_v15, %v625_v17  ;;  %v617_v23 = vadd.f32 %v616_v18, %v1545_v45 }
 0x107   : > { %966 = vst.msk [vmem:[%s1556_s27 + $0x24] sm:$0xf] %vm956_vm3, %v1201_v41  ;;  %v888_v24 = vsel %vm849_vm0, %v833_v14, %v872_v20 }
 0x108   : > { %971 = vst.msk [vmem:[%s1556_s27 + $0x38] sm:$0xf] %vm956_vm3, %v1206_v21  ;;  %v1204_v43 = vpack.c.bf16 %v888_v24, %v888_v24  ;;  %vm852_vm1 = vcmp.gt.f32.partialorder %v836_v22, 0.0  ;;  %v875_v26 = vmul.f32 %v1550_v50, %v836_v22  ;;  %v834_v27 = vadd.f32 %v809_v25, %v617_v23 }
 0x10a   : > { %969 = vst.msk [vmem:[%s1556_s27 + $0x30] sm:$0xf] %vm956_vm3, %v1204_v43  ;;  %v891_v28 = vsel %vm852_vm1, %v836_v22, %v875_v26  ;;  %vm850_vm2 = vcmp.gt.f32.partialorder %v834_v27, 0.0  ;;  %v873_v29 = vmul.f32 %v1550_v50, %v834_v27 }
 0x10b   : > { %v1207_v30 = vpack.c.bf16 %v891_v28, %v891_v28 }
 0x10c   : > { %v889_v45 = vsel %vm850_vm2, %v834_v27, %v873_v29 }
 0x10d   : > { %972 = vst.msk [vmem:[%s1556_s27 + $0x3c] sm:$0xf] %vm956_vm3, %v1207_v30  ;;  %v1205_v32 = vpack.c.bf16 %v889_v45, %v889_v45 }
 0x10f   : > { %970 = vst.msk [vmem:[%s1556_s27 + $0x34] sm:$0xf] %vm956_vm3, %v1205_v32 }
 0x110 PF: > { %s13_s16 = sadd.s32 1, %s1401_s16   ;;  %s1633_s12 = smov %s1393_s14 }
 0x111   : > { %p10_p7 = scmp.ge.s32.totalorder %s13_s16, 6   ;;  %s1634_s13 = smov %s1397_s15 }
 0x112   : > { %s1635_s14 = smov %s1638_s17  ;;  %s1636_s15 = smov %s1642_s18 }
 0x113   :  { %12 = sbr.rel (!%p10_p7) target bundleno = 3 (0x3), region = 73 }

// kernel: bottleneck_ir_equal_forward.3
= control target key start
LH: loop header
LB: loop body
LE: loop exit
PB: predicated region body
PF: predicated region fallthrough
CT: control target
= control target key end

     0   :  { %s1380_s30 = smov 0   ;;  %s1382_s10 = smov 0   ;;  %s1504_s0 = inlined_call_operand.vmem [shape: bf16[2,72,24], index: 0, kind: input, shape index: {}]   ;;  %s1505_s1 = inlined_call_operand.vmem [shape: bf16[2,72,24], index: 1, kind: input, shape index: {}]   ;;  %s1506_s2 = inlined_call_operand.vmem [shape: bf16[3,24,8], index: 2, kind: input, shape index: {}]   ;;  %s1507_s3 = inlined_call_operand.vmem [shape: f32[1,8], index: 3, kind: input, shape index: {}]   ;;  %s1508_s4 = inlined_call_operand.vmem [shape: f32[1,8], index: 4, kind: input, shape index: {}]   ;;  %s1509_s5 = inlined_call_operand.vmem [shape: bf16[2,64,4], index: 5, kind: input, shape index: {}]   ;;  %s1510_s6 = inlined_call_operand.vmem [shape: bf16[4,8], index: 6, kind: input, shape index: {}]   ;;  %s1511_s7 = inlined_call_operand.vmem [shape: f32[1,8], index: 7, kind: input, shape index: {}]   ;;  %s1512_s8 = inlined_call_operand.vmem [shape: f32[1,8], index: 8, kind: input, shape index: {}]   ;;  %s1513_s9 = inlined_call_operand.vmem [shape: f32[2,64,8], index: 9, kind: output, shape index: {}]  }
   0x1   :  { %1514 = sst [smem:[#allocation2_spill]] %s1510_s6  ;;  %s1384_s11 = smov 0  }
   0x2   :  { %s1386_s12 = smov 0   ;;  %s1388_s13 = smov 0  }
   0x3 LB: > { %s34_s14 = sadd.s32 1, %s1320_s11  ;;  %s38_s15 = sadd.s32 1, %s1324_s12  ;;  %s1328_s13 = sphi %s1388_s13, %s19_s13   ;;  %s1324_s12 = sphi %s1386_s12, %s1519_s12   ;;  %s1320_s11 = sphi %s1384_s11, %s1518_s11   ;;  %s1316_s10 = sphi %s1382_s10, %s1517_s10   ;;  %s1312_s30 = sphi %s1380_s30, %s1516_s30  }
   0x4   : > { %p36_p0 = scmp.ge.s32.totalorder %s34_s14, 2  ;;  %p1139_p1 = scmp.ge.s32.totalorder %s1328_s13, 1 }
   0x5   : > { %p387_p2 = scmp.lt.s32.totalorder %s1328_s13, 5 }
   0x6   : > { %s1521_s14 = smov (%p36_p0, %s34_s14), 0  ;;  %s1523_s15 = smov (!%p36_p0, %s38_s15), %s1324_s12 }
   0x7   : > { %p388_p3 = pnand %p1139_p1, %p387_p2  ;;  %p40_p4 = scmp.ge.s32.totalorder %s1523_s15, 2 }
   0x8   : > { %p464_p5 = scmp.lt.s32.totalorder (!%p388_p3), %s1316_s10, 1  ;;  %s1148_s24 = sshll.u32 (!%p388_p3), %s1312_s30, 5 }
   0x9   : > { %s1525_s15 = smov (%p40_p4, %s1523_s15), 0  ;;  %391 = sbr.rel (%p388_p3) target bundleno = 239 (0xef), region = 56 }
   0xa   : > { %s519_s25 = sshra.s32 (!%p388_p3), %s1148_s24, 3  ;;  %s696_s26 = sadd.s32 (!%p388_p3), 8, %s1148_s24 }
   0xb   : > { %s697_s29 = sshra.s32 (!%p388_p3), %s696_s26, 3  ;;  %s1515_s6 = sld [smem:[#allocation2_spill]] (!%p388_p3) }
   0xc   : > { %s1149_s19 = sshll.u32 (!%p388_p3), %s519_s25, 2  ;;  %s1166_s20 = sshll.u32 (!%p388_p3), %s697_s29, 2 }
   0xd   : > { %s1142_s21 = sshll.u32 (!%p388_p3), %s1312_s30, 2 }
   0xe   : > { %v1276_v0 = vld [vmem:[%s1506_s2 + $0x14] ss:$0 sps:$4 sm:$0xff]   ;;  %vm566_vm0 = vcmask 1043456   ;;  %v1278_v1 = vld [vmem:[%s1506_s2 + $0xc] sm:$0xff]   ;;  %v1277_v2 = vld [vmem:[%s1506_s2 + $0x8] ss:$0 sps:$4 sm:$0xff]  }
   0xf   : > { %1231 = vmatprep.subr.msk.bf16.mxu0 %vm566_vm0, %v1276_v0  ;;  %v568_v3 = vsel %vm566_vm0, %v1276_v0, 0  ;;  %v1279_v4 = vld [vmem:[%s1506_s2] sm:$0xff]   ;;  %1232 = vmatprep.subr.msk.bf16.mxu1 %vm566_vm0, %v1277_v2  ;;  %v645_v5 = vsel %vm566_vm0, %v1277_v2, 0  ;;  %s1527_s10 = smov (!%p464_p5, %s1316_s10), 1  ;;  %vm834_vm1 = vcmask 1041408   ;;  %vm559_vm2 = vcmask 195584  }
  0x10   : > { %1202 = vmatpush3.bf16.msra.mxu0 %v568_v3  ;;  %1210 = vmatpush3.bf16.msra.mxu1 %v645_v5  ;;  %v1282_v6 = vld [vmem:[%s1506_s2 + $0x20] ss:$0 sps:$4 sm:$0xff]   ;;  %s1235_s18 = smul.u32 36, %s1527_s10  ;;  %p487_p6 = scmp.lt.s32.totalorder %s1142_s21, 7  ;;  %v1285_v11 = vld [vmem:[%s1506_s2 + $0x18] sm:$0xff]   ;;  %vm827_vm3 = vcmask 31744  }
  0x11   : > { %1203 = vmatprep.subr.bf16.mxu0 %v1278_v1  ;;  %1211 = vmatprep.subr.bf16.mxu1 %v1279_v4  ;;  %v816_v7 = vld [vmem:[%s1515_s6] sm:$0x3]  ;;  %v735_v8 = vsel %vm566_vm0, %v1282_v6, 0  ;;  %s1143_s25 = sshll.u32 %s1527_s10, 3  ;;  %vm913_vm4 = vcmask 64512  }
  0x12   : > { %s473_s24 = scalar_lea.vmem %s1505_s1, %s1235_s18  ;;  %s468_s28 = scalar_lea.vmem %s1504_s0, %s1235_s18  ;;  %v836_v14 = vsel %vm834_vm1, %v816_v7, 0  ;;  %v1182_v28 = vld [vmem:[%s1511_s7] ss:$0 sm:$0xff] }
  0x13   : > { %s531_s16 = scalar_lea.vmem %s473_s24, %s1149_s19  ;;  %s522_s17 = scalar_lea.vmem %s468_s28, %s1149_s19  ;;  %v1176_v30 = vld [vmem:[%s1507_s3] ss:$0 sm:$0xff] }
  0x14   : > { %1204 = vmatpush3.bf16.msra.mxu0 %v1278_v1  ;;  %1212 = vmatpush3.bf16.msra.mxu1 %v1279_v4  ;;  %v1280_v9 = vld [vmem:[%s531_s16] sm:$0xff]   ;;  %s700_s30 = scalar_lea.vmem %s468_s28, %s1166_s20  ;;  %v1283_v12 = vld [vmem:[%s531_s16 + $0x8] sm:$0xff]   ;;  %s1529_s21 = smov (!%p487_p6, %s1142_s21), 7 }
  0x15   : > { %1233 = vmatprep.subr.msk.bf16.mxu0 %vm566_vm0, %v1282_v6  ;;  %1234 = vmatprep.subr.msk.bf16.mxu1 %vm834_vm1, %v816_v7  ;;  %v1281_v10 = vld [vmem:[%s522_s17] sm:$0xff]   ;;  %v1284_v13 = vld [vmem:[%s522_s17 + $0x8] sm:$0xff]   ;;  %s1460_s18 = sadd.s32 %s1143_s25, %s1529_s21 }
  0x16   : > { %1205 = vmatprep.mubr.msk.bf16.mxu0 %vm559_vm2, %v1280_v9  ;;  %1213 = vmatprep.mubr.msk.bf16.mxu1 %vm559_vm2, %v1281_v10  ;;  %v1286_v15 = vld [vmem:[%s700_s30] sm:$0xff]   ;;  %s1144_s6 = sshll.u32 %s1460_s18, 2  ;;  %v1288_v17 = vld [vmem:[%s700_s30 + $0x8] sm:$0xff]   ;;  %s1147_s17 = sshll.u32 %s1460_s18, 3 }
  0x17   : > { %1206 = vmatmul.mubr.msk.bf16.vlgmr.msra.gmra.mxu0 %vm559_vm2, %v1283_v12  ;;  %1214 = vmatmul.mubr.msk.bf16.vlgmr.msra.gmra.mxu1 %vm559_vm2, %v1284_v13  ;;  %s492_s20 = scalar_lea.vmem %s1509_s5, %s1144_s6  ;;  %v1183_v34 = vld [vmem:[%s1512_s8] ss:$0 sm:$0xff]  ;;  %s515_s29 = scalar_lea.vmem %s1513_s9, %s1147_s17 }
  0x18   : > { %1218 = vmatpush3.bf16.msra.mxu0 %v735_v8  ;;  %1226 = vmatpush3.bf16.msra.mxu1 %v836_v14  ;;  %v1287_v16 = vld [vmem:[%s492_s20] sm:$0xff]   ;;  %v1289_v18 = vld [vmem:[%s492_s20 + $0x8] sm:$0xff]  }
  0x19   : > { %1219 = vmatprep.subr.bf16.mxu0 %v1285_v11  ;;  %1221 = vmatprep.mubr.msk.bf16.mxu0 %vm559_vm2, %v1286_v15  ;;  %v1177_v35 = vld [vmem:[%s1508_s4] ss:$0 sm:$0xff] }
  0x1a   : > { %1227 = vmatprep.mubr.msk.bf16.mxu1 %vm827_vm3, %v1287_v16 }
  0x1c   : > { %1220 = vmatpush3.bf16.msra.mxu0 %v1285_v11 }
  0x1f   : > { %1222 = vmatmul.mubr.msk.bf16.vlgmr.msra.gmra.mxu0 %vm559_vm2, %v1288_v17  ;;  %1228 = vmatmul.mubr.msk.bf16.vlgmr.msra.gmra.mxu1 %vm827_vm3, %v1289_v18 }
  0xd7   : > { %v1207_v19 = vpop.f32.mrf.mxu0  ;;  %v1215_v20 = vpop.f32.mrf.mxu1 }
  0xd8   : > { %v690_v26 = vadd.f32 %v1215_v20, %v1207_v19 }
  0xd9   : > { %v604_v21 = vpop.f32.mrf.mxu0  ;;  %v681_v22 = vpop.f32.mrf.mxu1 }
  0xda   : > { %v682_v31 = vadd.f32 %v681_v22, %v604_v21 }
  0xdb   : > { %v1208_v23 = vpop.f32.mrf.mxu0  ;;  %v1216_v24 = vpop.f32.mrf.mxu1 }
  0xdc   : > { %v693_v38 = vadd.f32 %v1216_v24, %v1208_v23 }
  0xdd   : > { %v607_v25 = vpop.f32.mrf.mxu0  ;;  %v684_v27 = vpop.f32.mrf.mxu1 }
  0xde   : > { %v685_v45 = vadd.f32 %v684_v27, %v607_v25 }
  0xdf   : > { %v1223_v29 = vpop.f32.mrf.mxu0  ;;  %v1229_v33 = vpop.f32.mrf.mxu1 }
  0xe0   : > { %v788_v32 = vadd.f32 %v1223_v29, %v690_v26  ;;  %v896_v36 = vmul.f32 %v1229_v33, %v1182_v28 }
  0xe1   : > { %v771_v37 = vpop.f32.mrf.mxu0  ;;  %v872_v41 = vpop.f32.mrf.mxu1 }
  0xe2   : > { %v799_v39 = vmul.f32 %v1176_v30, %v788_v32  ;;  %v786_v40 = vadd.f32 %v771_v37, %v682_v31  ;;  %v907_v42 = vadd.f32 %v1183_v34, %v896_v36  ;;  %v894_v43 = vmul.f32 %v1182_v28, %v872_v41 }
  0xe3   : > { %v1224_v44 = vpop.f32.mrf.mxu0  ;;  %v1230_v49 = vpop.f32.mrf.mxu1 }
  0xe4   : > { %v810_v46 = vadd.f32 %v1177_v35, %v799_v39  ;;  %v797_v47 = vmul.f32 %v1176_v30, %v786_v40  ;;  %v789_v48 = vadd.f32 %v1224_v44, %v693_v38  ;;  %v905_v50 = vadd.f32 %v1183_v34, %v894_v43 }
  0xe5   : > { %v897_v51 = vmul.f32 %v1230_v49, %v1182_v28  ;;  %v774_v52 = vpop.f32.mrf.mxu0  ;;  %v875_v57 = vpop.f32.mrf.mxu1 }
  0xe6   : > { %v911_v53 = vadd.f32 %v907_v42, %v810_v46  ;;  %v808_v54 = vadd.f32 %v1177_v35, %v797_v47  ;;  %v800_v55 = vmul.f32 %v1176_v30, %v789_v48  ;;  %v787_v56 = vadd.f32 %v774_v52, %v685_v45 }
  0xe7   : > { %v895_v58 = vmul.f32 %v1182_v28, %v875_v57  ;;  %v908_v61 = vadd.f32 %v1183_v34, %v897_v51 }
  0xe8   : > { %916 = vst.msk [vmem:[%s515_s29 + $0x10] sm:$0xff] %vm913_vm4, %v911_v53  ;;  %v909_v59 = vadd.f32 %v905_v50, %v808_v54  ;;  %v811_v60 = vadd.f32 %v1177_v35, %v800_v55  ;;  %v798_v62 = vmul.f32 %v1176_v30, %v787_v56 }
  0xe9   : > { %v906_v1 = vadd.f32 %v1183_v34, %v895_v58 }
  0xea   : > { %914 = vst.msk [vmem:[%s515_s29] sm:$0xff] %vm913_vm4, %v909_v59  ;;  %v912_v63 = vadd.f32 %v908_v61, %v811_v60  ;;  %v809_v0 = vadd.f32 %v1177_v35, %v798_v62 }
  0xec   : > { %917 = vst.msk [vmem:[%s515_s29 + $0x18] sm:$0xff] %vm913_vm4, %v912_v63  ;;  %v910_v2 = vadd.f32 %v906_v1, %v809_v0 }
  0xee   : > { %915 = vst.msk [vmem:[%s515_s29 + $0x8] sm:$0xff] %vm913_vm4, %v910_v2 }
  0xef PF: > { %s19_s13 = sadd.s32 1, %s1328_s13   ;;  %s1516_s30 = smov %s1320_s11 }
  0xf0   : > { %p16_p7 = scmp.ge.s32.totalorder %s19_s13, 6   ;;  %s1517_s10 = smov %s1324_s12 }
  0xf1   : > { %s1518_s11 = smov %s1521_s14  ;;  %s1519_s12 = smov %s1525_s15 }
  0xf2   :  { %18 = sbr.rel (!%p16_p7) target bundleno = 3 (0x3), region = 115 }

</bundles_post_ra>
